<compile_context>
chip_gen: v6e
topology: v6e:2x2x1
jax: 0.10.0
libtpu: 0.0.40
codegen_flags: <defaults>
</compile_context>

<pallas_src>
import functools

import jax
import jax.numpy as jnp
from jax import lax
from jax.experimental import pallas as pl
from jax.experimental.pallas import tpu as pltpu


_MAX_TILE_ROWS = 2048  # 2048 rows x 128 lanes x 4 B = 1 MiB per input block


def _round_up(x, m):
    return ((x + m - 1) // m) * m


def _lbtw_mse_single_kernel(p1_ref, p2_ref, p3_ref, p4_ref, t_ref, out_ref):
    """Whole problem in one block: reduce straight into the SMEM output.

    The wrapper zero-pads to a multiple of 128, so pad lanes contribute 0.
    """
    t = t_ref[...].astype(jnp.float32)
    for k, p_ref in enumerate((p1_ref, p2_ref, p3_ref, p4_ref)):
        d = p_ref[...].astype(jnp.float32) - t
        out_ref[k] = jnp.sum(d * d)


def _lbtw_mse_grid_kernel(p1_ref, p2_ref, p3_ref, p4_ref, t_ref, out_ref,
                          acc_ref, *, total, tile):
    """Streaming reduction over row tiles.

    Per step: per-head (pred - target)^2, row-reduced (VALU tree add, no XLU)
    into a small (4, 8, 128) VMEM accumulator.  The last (possibly partial)
    tile is masked against the true element count; the cross-lane reduction
    and the 4 SMEM scalar writes happen only on the final step.
    """
    i = pl.program_id(0)
    nsteps = pl.num_programs(0)
    preds = (p1_ref, p2_ref, p3_ref, p4_ref)

    @pl.when(i == 0)
    def _init():
        acc_ref[...] = jnp.zeros_like(acc_ref)

    t = t_ref[...].astype(jnp.float32)

    def _accumulate(mask):
        for k, p_ref in enumerate(preds):
            d = p_ref[...].astype(jnp.float32) - t
            sq = d * d
            if mask is not None:
                sq = jnp.where(mask, sq, 0.0)
            # (tile, 128) -> (tile//8, 8, 128): tile-aligned reshape (free),
            # then a pure-VALU add over the leading axis down to one vreg/head.
            acc_ref[k] += sq.reshape(tile // 8, 8, 128).sum(axis=0)

    @pl.when(i < nsteps - 1)
    def _main():
        _accumulate(None)

    @pl.when(i == nsteps - 1)
    def _last():
        row = lax.broadcasted_iota(jnp.int32, (tile, 128), 0)
        lane = lax.broadcasted_iota(jnp.int32, (tile, 128), 1)
        flat = (i * tile + row) * 128 + lane
        _accumulate(flat < total)
        # One cross-lane/sublane reduction per head, done exactly once.
        for k in range(4):
            out_ref[k] = jnp.sum(acc_ref[k])


def lbtw_loss(pred1, pred2, pred3, pred4, target):
    """Equivalent of LBTW_Loss(nn.MSELoss())(pred1..pred4, target)."""
    total = int(pred1.size)

    padded = _round_up(total, 128)
    pad = padded - total
    rows = padded // 128

    def flat(x):
        v = x.reshape(-1)
        if pad:
            # Only in the lane-misaligned case; zeros contribute 0 to the sums
            # and are additionally masked out in the grid kernel.
            v = jnp.pad(v, (0, pad))
        return v.reshape(rows, 128)

    arrays = [flat(a) for a in (pred1, pred2, pred3, pred4, target)]

    if rows <= _MAX_TILE_ROWS:
        # Single-step path: one full-array block, no scratch, no pipeline.
        sums = pl.pallas_call(
            _lbtw_mse_single_kernel,
            out_shape=jax.ShapeDtypeStruct((4,), jnp.float32),
            grid=(1,),
            in_specs=[pl.BlockSpec((rows, 128), lambda i: (0, 0))
                      for _ in range(5)],
            out_specs=pl.BlockSpec(memory_space=pltpu.SMEM),
            compiler_params=pltpu.CompilerParams(
                dimension_semantics=("arbitrary",)),
        )(*arrays)
    else:
        tile = _MAX_TILE_ROWS
        grid = (pl.cdiv(rows, tile),)
        kernel = functools.partial(_lbtw_mse_grid_kernel, total=total,
                                   tile=tile)
        sums = pl.pallas_call(
            kernel,
            out_shape=jax.ShapeDtypeStruct((4,), jnp.float32),
            grid=grid,
            in_specs=[pl.BlockSpec((tile, 128), lambda i: (i, 0))
                      for _ in range(5)],
            out_specs=pl.BlockSpec(memory_space=pltpu.SMEM),
            scratch_shapes=[pltpu.VMEM((4, 8, 128), jnp.float32)],
            compiler_params=pltpu.CompilerParams(
                # Sequential reduction axis: the resident accumulator / SMEM
                # output must NOT be sharded across cores.
                dimension_semantics=("arbitrary",)),
        )(*arrays)

    losses = sums / jnp.float32(total)    # mean reduction (MSELoss default)
    sub_loss = [losses[0], losses[1], losses[2], losses[3]]
    return sub_loss, losses[0], losses[1], losses[2], losses[3]


if __name__ == "__main__":
    key = jax.random.PRNGKey(0)
    k1, k2, k3, k4, kt = jax.random.split(key, 5)
    shape = (2, 4, 16, 16)  # NCHW, small synthetic shapes

    pred1 = jax.random.normal(k1, shape, dtype=jnp.float32)
    pred2 = jax.random.normal(k2, shape, dtype=jnp.float32)
    pred3 = jax.random.normal(k3, shape, dtype=jnp.float32)
    pred4 = jax.random.normal(k4, shape, dtype=jnp.float32)
    target = jax.random.normal(kt, shape, dtype=jnp.float32)

    sub_loss, l1, l2, l3, l4 = lbtw_loss(pred1, pred2, pred3, pred4, target)
    jax.block_until_ready((l1, l2, l3, l4))

    # reference check (pure JAX MSE)
    refs = [jnp.mean((p - target) ** 2) for p in (pred1, pred2, pred3, pred4)]
    for got, ref in zip((l1, l2, l3, l4), refs):
        assert jnp.allclose(got, ref, rtol=1e-5, atol=1e-5), (got, ref)

    print("KERNEL_OK")
</pallas_src>

<mosaic_0001>
module attributes {stable_mosaic.version = 11 : i64} {
  func.func @_lbtw_mse_single_kernel(%arg0: i32, %arg1: memref<16x128xf32, #tpu.memory_space<vmem>>, %arg2: memref<16x128xf32, #tpu.memory_space<vmem>>, %arg3: memref<16x128xf32, #tpu.memory_space<vmem>>, %arg4: memref<16x128xf32, #tpu.memory_space<vmem>>, %arg5: memref<16x128xf32, #tpu.memory_space<vmem>>, %arg6: memref<4xf32, #tpu.memory_space<smem>>) attributes {dimension_semantics = [#tpu.dimension_semantics<arbitrary>], iteration_bounds = array<i64: 1>, scalar_prefetch = 0 : i64, scratch_operands = 0 : i64, tpu.core_type = #tpu.core_type<tc>, window_params = [{pipeline_mode = #tpu.pipeline_mode<synchronous>, transform_indices = @transform_0, window_bounds = array<i64: 16, 128>}, {pipeline_mode = #tpu.pipeline_mode<synchronous>, transform_indices = @transform_1, window_bounds = array<i64: 16, 128>}, {pipeline_mode = #tpu.pipeline_mode<synchronous>, transform_indices = @transform_2, window_bounds = array<i64: 16, 128>}, {pipeline_mode = #tpu.pipeline_mode<synchronous>, transform_indices = @transform_3, window_bounds = array<i64: 16, 128>}, {pipeline_mode = #tpu.pipeline_mode<synchronous>, transform_indices = @transform_4, window_bounds = array<i64: 16, 128>}, {transform_indices = @transform_5, window_bounds = array<i64: 4>}]} {
    %c0 = arith.constant 0 : index
    %c0_0 = arith.constant 0 : index
    %0 = vector.load %arg5[%c0, %c0_0] : memref<16x128xf32, #tpu.memory_space<vmem>>, vector<16x128xf32>
    %c0_1 = arith.constant 0 : index
    %c0_2 = arith.constant 0 : index
    %1 = vector.load %arg1[%c0_1, %c0_2] : memref<16x128xf32, #tpu.memory_space<vmem>>, vector<16x128xf32>
    %2 = arith.subf %1, %0 : vector<16x128xf32>
    %3 = arith.mulf %2, %2 : vector<16x128xf32>
    %4 = vector.shape_cast %3 : vector<16x128xf32> to vector<1x16x128xf32>
    %cst = arith.constant dense<0.000000e+00> : vector<1xf32>
    %5 = vector.multi_reduction <add>, %4, %cst [1, 2] : vector<1x16x128xf32> to vector<1xf32>
    %6 = vector.shape_cast %5 : vector<1xf32> to vector<1x1x1xf32>
    %7 = vector.extract %6[0, 0, 0] : f32 from vector<1x1x1xf32>
    %c0_3 = arith.constant 0 : index
    %8 = memref.load %arg6[%c0_3] : memref<4xf32, #tpu.memory_space<smem>>
    memref.store %7, %arg6[%c0_3] : memref<4xf32, #tpu.memory_space<smem>>
    %c0_4 = arith.constant 0 : index
    %c0_5 = arith.constant 0 : index
    %9 = vector.load %arg2[%c0_4, %c0_5] : memref<16x128xf32, #tpu.memory_space<vmem>>, vector<16x128xf32>
    %10 = arith.subf %9, %0 : vector<16x128xf32>
    %11 = arith.mulf %10, %10 : vector<16x128xf32>
    %12 = vector.shape_cast %11 : vector<16x128xf32> to vector<1x16x128xf32>
    %cst_6 = arith.constant dense<0.000000e+00> : vector<1xf32>
    %13 = vector.multi_reduction <add>, %12, %cst_6 [1, 2] : vector<1x16x128xf32> to vector<1xf32>
    %14 = vector.shape_cast %13 : vector<1xf32> to vector<1x1x1xf32>
    %15 = vector.extract %14[0, 0, 0] : f32 from vector<1x1x1xf32>
    %c1 = arith.constant 1 : index
    %16 = memref.load %arg6[%c1] : memref<4xf32, #tpu.memory_space<smem>>
    memref.store %15, %arg6[%c1] : memref<4xf32, #tpu.memory_space<smem>>
    %c0_7 = arith.constant 0 : index
    %c0_8 = arith.constant 0 : index
    %17 = vector.load %arg3[%c0_7, %c0_8] : memref<16x128xf32, #tpu.memory_space<vmem>>, vector<16x128xf32>
    %18 = arith.subf %17, %0 : vector<16x128xf32>
    %19 = arith.mulf %18, %18 : vector<16x128xf32>
    %20 = vector.shape_cast %19 : vector<16x128xf32> to vector<1x16x128xf32>
    %cst_9 = arith.constant dense<0.000000e+00> : vector<1xf32>
    %21 = vector.multi_reduction <add>, %20, %cst_9 [1, 2] : vector<1x16x128xf32> to vector<1xf32>
    %22 = vector.shape_cast %21 : vector<1xf32> to vector<1x1x1xf32>
    %23 = vector.extract %22[0, 0, 0] : f32 from vector<1x1x1xf32>
    %c2 = arith.constant 2 : index
    %24 = memref.load %arg6[%c2] : memref<4xf32, #tpu.memory_space<smem>>
    memref.store %23, %arg6[%c2] : memref<4xf32, #tpu.memory_space<smem>>
    %c0_10 = arith.constant 0 : index
    %c0_11 = arith.constant 0 : index
    %25 = vector.load %arg4[%c0_10, %c0_11] : memref<16x128xf32, #tpu.memory_space<vmem>>, vector<16x128xf32>
    %26 = arith.subf %25, %0 : vector<16x128xf32>
    %27 = arith.mulf %26, %26 : vector<16x128xf32>
    %28 = vector.shape_cast %27 : vector<16x128xf32> to vector<1x16x128xf32>
    %cst_12 = arith.constant dense<0.000000e+00> : vector<1xf32>
    %29 = vector.multi_reduction <add>, %28, %cst_12 [1, 2] : vector<1x16x128xf32> to vector<1xf32>
    %30 = vector.shape_cast %29 : vector<1xf32> to vector<1x1x1xf32>
    %31 = vector.extract %30[0, 0, 0] : f32 from vector<1x1x1xf32>
    %c3 = arith.constant 3 : index
    %32 = memref.load %arg6[%c3] : memref<4xf32, #tpu.memory_space<smem>>
    memref.store %31, %arg6[%c3] : memref<4xf32, #tpu.memory_space<smem>>
    return
  }
  func.func @transform_0(%arg0: i32) -> (i32, i32) {
    %c0_i32 = arith.constant 0 : i32
    %c0_i32_0 = arith.constant 0 : i32
    %c0_i32_1 = arith.constant 0 : i32
    return %c0_i32, %c0_i32_0 : i32, i32
  }
  func.func @transform_1(%arg0: i32) -> (i32, i32) {
    %c0_i32 = arith.constant 0 : i32
    %c0_i32_0 = arith.constant 0 : i32
    %c0_i32_1 = arith.constant 0 : i32
    return %c0_i32, %c0_i32_0 : i32, i32
  }
  func.func @transform_2(%arg0: i32) -> (i32, i32) {
    %c0_i32 = arith.constant 0 : i32
    %c0_i32_0 = arith.constant 0 : i32
    %c0_i32_1 = arith.constant 0 : i32
    return %c0_i32, %c0_i32_0 : i32, i32
  }
  func.func @transform_3(%arg0: i32) -> (i32, i32) {
    %c0_i32 = arith.constant 0 : i32
    %c0_i32_0 = arith.constant 0 : i32
    %c0_i32_1 = arith.constant 0 : i32
    return %c0_i32, %c0_i32_0 : i32, i32
  }
  func.func @transform_4(%arg0: i32) -> (i32, i32) {
    %c0_i32 = arith.constant 0 : i32
    %c0_i32_0 = arith.constant 0 : i32
    %c0_i32_1 = arith.constant 0 : i32
    return %c0_i32, %c0_i32_0 : i32, i32
  }
  func.func @transform_5(%arg0: i32) -> i32 {
    %c0_i32 = arith.constant 0 : i32
    %c0_i32_0 = arith.constant 0 : i32
    return %c0_i32 : i32
  }
}

</mosaic_0001>

<bundles_post_ra>
// kernel: tpu_custom_call.1
= control target key start
LH: loop header
LB: loop body
LE: loop exit
PB: predicated region body
PF: predicated region fallthrough
CT: control target
= control target key end

     0   :  { %10 = vsyncpa [#allocation3], 0  ;;  %s382_s0 = inlined_call_operand.hbm [shape: f32[16,128], index: 0, kind: input, shape index: {}]   ;;  %s383_s1 = inlined_call_operand.hbm [shape: f32[16,128], index: 1, kind: input, shape index: {}]   ;;  %s384_s2 = inlined_call_operand.hbm [shape: f32[16,128], index: 2, kind: input, shape index: {}]   ;;  %s385_s3 = inlined_call_operand.hbm [shape: f32[16,128], index: 3, kind: input, shape index: {}]   ;;  %s386_s4 = inlined_call_operand.hbm [shape: f32[16,128], index: 4, kind: input, shape index: {}]   ;;  %s387_s5 = inlined_call_operand.hbm [shape: f32[4], index: 5, kind: output, shape index: {}]  }
   0x1   :  { %11 = vsyncpa [#allocation6], 0 }
   0x2   :  { %12 = vsyncpa [#allocation9], 0 }
   0x3   :  { %13 = vsyncpa [#allocation4], 0  ;;  %s311_s18 = smov [#allocation5]   ;;  %s312_s20 = smov [#allocation8]  }
   0x4   :  { %s31_s19 = sshll.u32 %s311_s18, 4  ;;  %s55_s21 = sshll.u32 %s312_s20, 4  ;;  %s32_s19 = int_to_ptr.vmem [resolvable:$true] %s31_s19  ;;  %s56_s21 = int_to_ptr.vmem [resolvable:$true] %s55_s21 }
   0x5   :  { %s203_s22 = scalar_lea.vmem %s32_s19, 256  ;;  %p208_p1 = scmp.lt.s32.totalorder %s32_s19, %s32_s19 }
   0x6   :  { %p204_p0 = scmp.ne.s32.totalorder %s32_s19, %s203_s22  ;;  %p209_p2 = scmp.lt.s32.totalorder %s203_s22, %s203_s22 }
   0x8   :  { %p210_p3 = por %p209_p2, %p208_p1 }
   0xa   :  { %p211_p4 = pnand %p210_p3, %p204_p0 }
   0xc   :  { %214 = shalt.err (!%p211_p4)
}
   0xd   :  { %s313_s23 = smov 128   ;;  %s314_s24 = smov 8  }
   0xe   :  { %37 = dma.hbm_to_vmem [thread:$0]  %s383_s1, 256, %s32_s19, [#allocation6], %s313_s23, %s313_s23, %s314_s24  }
   0xf   :  { %s223_s27 = scalar_lea.vmem %s56_s21, 256  ;;  %p228_p6 = scmp.lt.s32.totalorder %s56_s21, %s56_s21 }
  0x10   :  { %p224_p5 = scmp.ne.s32.totalorder %s56_s21, %s223_s27  ;;  %p229_p7 = scmp.lt.s32.totalorder %s223_s27, %s223_s27 }
  0x12   :  { %p230_p8 = por %p229_p7, %p228_p6 }
  0x14   :  { %p231_p9 = pnand %p230_p8, %p224_p5 }
  0x16   :  { %234 = shalt.err (!%p231_p9)
}
  0x17   :  { %61 = dma.hbm_to_vmem [thread:$0]  %s385_s3, 256, %s56_s21, [#allocation9], %s313_s23, %s313_s23, %s314_s24  }
  0x18   :  { %s315_s30 = smov [#allocation2]   ;;  %s316_s7 = smov [#allocation7]  }
  0x19   :  { %s19_s6 = sshll.u32 %s315_s30, 4  ;;  %s43_s8 = sshll.u32 %s316_s7, 4  ;;  %s20_s6 = int_to_ptr.vmem [resolvable:$true] %s19_s6  ;;  %s44_s8 = int_to_ptr.vmem [resolvable:$true] %s43_s8 }
  0x1a   :  { %s243_s1 = scalar_lea.vmem %s20_s6, 256  ;;  %p248_p11 = scmp.lt.s32.totalorder %s20_s6, %s20_s6 }
  0x1b   :  { %p244_p10 = scmp.ne.s32.totalorder %s20_s6, %s243_s1  ;;  %p249_p12 = scmp.lt.s32.totalorder %s243_s1, %s243_s1 }
  0x1d   :  { %p250_p13 = por %p249_p12, %p248_p11 }
  0x1f   :  { %p251_p0 = pnand %p250_p13, %p244_p10 }
  0x21   :  { %254 = shalt.err (!%p251_p0)
}
  0x22   :  { %25 = dma.hbm_to_vmem [thread:$0]  %s382_s0, 256, %s20_s6, [#allocation3], %s313_s23, %s313_s23, %s314_s24  }
  0x23   :  { %s263_s3 = scalar_lea.vmem %s44_s8, 256  ;;  %p268_p2 = scmp.lt.s32.totalorder %s44_s8, %s44_s8 }
  0x24   :  { %p264_p1 = scmp.ne.s32.totalorder %s44_s8, %s263_s3  ;;  %p269_p3 = scmp.lt.s32.totalorder %s263_s3, %s263_s3 }
  0x26   :  { %p270_p4 = por %p269_p3, %p268_p2 }
  0x28   :  { %p271_p5 = pnand %p270_p4, %p264_p1 }
  0x2a   :  { %274 = shalt.err (!%p271_p5)
}
  0x2b   :  { %49 = dma.hbm_to_vmem [thread:$0]  %s384_s2, 256, %s44_s8, [#allocation6], %s313_s23, %s313_s23, %s314_s24  }
  0x2c   :  { %s317_s13 = smov [#allocation10]  }
  0x2d   :  { %s67_s14 = sshll.u32 %s317_s13, 4  ;;  %s68_s14 = int_to_ptr.vmem [resolvable:$true] %s67_s14 }
  0x2e   :  { %s283_s15 = scalar_lea.vmem %s68_s14, 256  ;;  %p288_p7 = scmp.lt.s32.totalorder %s68_s14, %s68_s14 }
  0x2f   :  { %p284_p6 = scmp.ne.s32.totalorder %s68_s14, %s283_s15  ;;  %p289_p8 = scmp.lt.s32.totalorder %s283_s15, %s283_s15 }
  0x31   :  { %p290_p9 = por %p289_p8, %p288_p7 }
  0x33   :  { %p291_p10 = pnand %p290_p9, %p284_p6 }
  0x35   :  { %294 = shalt.err (!%p291_p10)
}
  0x36   :  { %73 = dma.hbm_to_vmem [thread:$0]  %s386_s4, 256, %s68_s14, [#allocation9], %s313_s23, %s313_s23, %s314_s24  }
  0x37   :  { %303 = dma.done.wait [#allocation3], 256  }
  0x38   :  { %304 = vsyncadd [#allocation3], 4294967040 }
  0x39   :  { %305 = dma.done.wait [#allocation6], 512  }
  0x3a   :  { %306 = vsyncadd [#allocation6], 4294966784 }
  0x3b   :  { %307 = dma.done.wait [#allocation9], 512  }
  0x3c   :  { %308 = vsyncadd [#allocation9], 4294966784  ;;  %v89_v0 = vld [vmem:[#allocation10] sm:$0xff]  ;;  %v90_v1 = vld [vmem:[#allocation10 + $0x8] sm:$0xff]  ;;  %s318_s19 = smov [#allocation11]  }
  0x3d   :  { %v127_v2 = vld [vmem:[#allocation7] sm:$0xff]  ;;  %v128_v3 = vld [vmem:[#allocation7 + $0x8] sm:$0xff]  ;;  %v145_v10 = vld [vmem:[#allocation8] sm:$0xff] }
  0x3e   :  { %v129_v4 = vsub.f32 %v127_v2, %v89_v0  ;;  %v91_v5 = vld [vmem:[#allocation2] sm:$0xff]  ;;  %v92_v6 = vld [vmem:[#allocation2 + $0x8] sm:$0xff]  ;;  %v130_v7 = vsub.f32 %v128_v3, %v90_v1  ;;  %v146_v11 = vld [vmem:[#allocation8 + $0x8] sm:$0xff]  ;;  %v147_v14 = vsub.f32 %v145_v10, %v89_v0 }
  0x3f   :  { %v93_v8 = vsub.f32 %v91_v5, %v89_v0  ;;  %v94_v9 = vsub.f32 %v92_v6, %v90_v1  ;;  %v109_v12 = vld [vmem:[#allocation5] sm:$0xff]  ;;  %v148_v15 = vsub.f32 %v146_v11, %v90_v1  ;;  %v110_v16 = vld [vmem:[#allocation5 + $0x8] sm:$0xff] }
  0x40   :  { %v131_v13 = vmul.f32 %v129_v4, %v129_v4  ;;  %v111_v17 = vsub.f32 %v109_v12, %v89_v0  ;;  %v132_v18 = vmul.f32 %v130_v7, %v130_v7  ;;  %v112_v21 = vsub.f32 %v110_v16, %v90_v1 }
  0x41   :  { %v95_v19 = vmul.f32 %v93_v8, %v93_v8  ;;  %v96_v20 = vmul.f32 %v94_v9, %v94_v9  ;;  %v149_v22 = vmul.f32 %v147_v14, %v147_v14  ;;  %v150_v23 = vmul.f32 %v148_v15, %v148_v15 }
  0x42   :  { %v113_v24 = vmul.f32 %v111_v17, %v111_v17  ;;  %v133_v25 = vadd.f32 %v132_v18, %v131_v13  ;;  %v114_v27 = vmul.f32 %v112_v21, %v112_v21 }
  0x43   :  { %v97_v26 = vadd.f32 %v96_v20, %v95_v19  ;;  %v151_v28 = vadd.f32 %v150_v23, %v149_v22 }
  0x44   :  { %134 = vadd.xlane.f32.xlu1 %v133_v25  ;;  %v115_v29 = vadd.f32 %v114_v27, %v113_v24 }
  0x45   :  { %98 = vadd.xlane.f32.xlu0 %v97_v26 }
  0x48   :  { %152 = vadd.xlane.f32.xlu1 %v151_v28 }
  0x49   :  { %116 = vadd.xlane.f32.xlu0 %v115_v29 }
  0xcd   :  { %v135_v30 = vpop.xlane.xlu1 %134 }
  0xce   :  { %v99_v31 = vpop.xlane.xlu0 %98  ;;  %v136_v32 = vrot.slane %v135_v30, 4 }
  0xcf   :  { %v100_v33 = vrot.slane %v99_v31, 4 }
  0xd0   :  { %v137_v34 = vadd.f32 %v136_v32, %v135_v30 }
  0xd1   :  { %v101_v35 = vadd.f32 %v100_v33, %v99_v31  ;;  %v153_v36 = vpop.xlane.xlu1 %152 }
  0xd2   :  { %v117_v37 = vpop.xlane.xlu0 %116  ;;  %v138_v38 = vrot.slane %v137_v34, 2  ;;  %v154_v40 = vrot.slane %v153_v36, 4 }
  0xd3   :  { %v102_v39 = vrot.slane %v101_v35, 2  ;;  %v118_v41 = vrot.slane %v117_v37, 4 }
  0xd4   :  { %v155_v42 = vadd.f32 %v154_v40, %v153_v36  ;;  %v139_v45 = vadd.f32 %v138_v38, %v137_v34 }
  0xd5   :  { %v119_v43 = vadd.f32 %v118_v41, %v117_v37  ;;  %v103_v44 = vadd.f32 %v102_v39, %v101_v35 }
  0xd6   :  { %v156_v46 = vrot.slane %v155_v42, 2  ;;  %v140_v52 = vrot.slane %v139_v45, 1 }
  0xd7   :  { %v120_v47 = vrot.slane %v119_v43, 2  ;;  %v104_v48 = vrot.slane %v103_v44, 1 }
  0xd8   :  { %v157_v49 = vadd.f32 %v156_v46, %v155_v42  ;;  %v141_v57 = vadd.f32 %v140_v52, %v139_v45 }
  0xd9   :  { %v121_v50 = vadd.f32 %v120_v47, %v119_v43  ;;  %v105_v51 = vadd.f32 %v104_v48, %v103_v44 }
  0xda   :  { %v158_v54 = vrot.slane %v157_v49, 1 }
  0xdb   :  { %179 = vpush %v105_v51  ;;  %v122_v53 = vrot.slane %v121_v50, 1 }
  0xdc   :  { %v159_v56 = vadd.f32 %v158_v54, %v157_v49 }
  0xdd   :  { %v123_v55 = vadd.f32 %v122_v53, %v121_v50 }
  0xdf   :  { %181 = vpush %v123_v55 }
  0xe0   :  { %183 = vpush %v141_v57 }
  0xe1   :  { %185 = vpush %v159_v56 }
 0x10c   :  { %s180_s2 = spop %179 }
 0x10d   :  { %108 = sst [smem:[#allocation11]] %s180_s2 }
 0x110   :  { %s182_s4 = spop %181 }
 0x111   :  { %126 = sst [smem:[#allocation11 + $0x1]] %s182_s4  ;;  %s184_s17 = spop %183 }
 0x112   :  { %144 = sst [smem:[#allocation11 + $0x2]] %s184_s17  ;;  %s186_s18 = spop %185 }
 0x113   :  { %162 = sst [smem:[#allocation11 + $0x3]] %s186_s18 }
 0x114   :  { %170 = dma.smem_to_hbm %s318_s19, 16, %s387_s5, [#allocation4]  }
 0x115   :  { %309 = dma.done.wait [#allocation4], 16  }
 0x116   :  { %310 = vsyncadd [#allocation4], 4294967280 }
 0x117   :  { %174 = sfence }
 0x118   :  { %175 = vsyncpa [#allocation3], 1 }
 0x119   :  { %176 = vsyncpa [#allocation6], 1 }
 0x11a   :  { %177 = vsyncpa [#allocation9], 1 }
 0x11b   :  { %178 = vsyncpa [#allocation4], 1 }

</bundles_post_ra>
